<compile_context>
chip_gen: v5e
topology: v5e:2x2
jax: 0.10.0
libtpu: 0.0.40
codegen_flags: <defaults>
</compile_context>

<pallas_src>
import functools

import jax
import jax.numpy as jnp
from jax.experimental import pallas as pl
from jax.experimental.pallas import tpu as pltpu

HIDDEN = 128


def _round_up(n, m):
    return ((n + m - 1) // m) * m


def dqn_mlp_kernel(x_ref, w1_ref, b1_ref, w2_ref, b2_ref, w3_ref, b3_ref, out_ref,
                   *, precision):
    """One batch tile: three back-to-back MXU matmuls, bias + ReLU in f32 on the VPU."""
    cdt = w1_ref.dtype                      # compute dtype of the MXU operands
    x = x_ref[...].astype(cdt)              # (tm, Din); cast is a no-op on the f32 path

    h1 = jnp.dot(x, w1_ref[...], preferred_element_type=jnp.float32, precision=precision)
    h1 = jnp.maximum(h1 + b1_ref[...], 0.0).astype(cdt)        # (tm, 128)

    h2 = jnp.dot(h1, w2_ref[...], preferred_element_type=jnp.float32, precision=precision)
    h2 = jnp.maximum(h2 + b2_ref[...], 0.0).astype(cdt)        # (tm, 128)

    y = jnp.dot(h2, w3_ref[...], preferred_element_type=jnp.float32, precision=precision)
    out_ref[...] = (y + b3_ref[...]).astype(out_ref.dtype)     # (tm, Dout)


@functools.partial(jax.jit, static_argnames=("tm", "use_bf16", "precision"))
def dqn_forward(x, params, *, tm=None, use_bf16=False,
                precision=jax.lax.Precision.DEFAULT):
    """Forward pass of DQNNetwork.

    x: (B, input_dim) f32.
    params: dict with w1 (Din,128), b1 (1,128), w2 (128,128), b2 (1,128),
            w3 (128,Dout), b3 (1,Dout).
    use_bf16: run the MXU with bf16 weights/activations (f32 accumulation kept).
    precision: matmul precision; DEFAULT for throughput, HIGHEST for f32 parity.
    """
    w1, b1 = params["w1"], params["b1"]
    w2, b2 = params["w2"], params["b2"]
    w3, b3 = params["w3"], params["b3"]

    B, d_in = x.shape
    d_out = w3.shape[1]

    sublane = 16 if use_bf16 else 8
    if tm is None:
        # Target >= 2 grid steps (v7x: 2 TensorCores) while capping the tile at 2048
        # rows to amortize per-step overhead; never below one sublane group.
        half = _round_up(max(1, -(-B // 2)), sublane)
        tm = max(sublane, min(2048, half))
    grid = (pl.cdiv(B, tm),)

    w_dtype = jnp.bfloat16 if use_bf16 else jnp.float32
    w1c = w1.astype(w_dtype)
    w2c = w2.astype(w_dtype)
    w3c = w3.astype(w_dtype)
    # Biases stay f32: they are added to the f32 accumulator.
    b1c = b1.astype(jnp.float32)
    b2c = b2.astype(jnp.float32)
    b3c = b3.astype(jnp.float32)

    # Weights/biases: full-extent blocks, same block every grid step (VMEM-resident).
    # A dead second buffer for these resident operands is ~0.3 MiB total, so we skip
    # pipeline_mode=pl.Buffered(1) to keep the compile surface minimal.
    w1_spec = pl.BlockSpec((d_in, HIDDEN), lambda i: (0, 0))
    b1_spec = pl.BlockSpec((1, HIDDEN), lambda i: (0, 0))
    w2_spec = pl.BlockSpec((HIDDEN, HIDDEN), lambda i: (0, 0))
    b2_spec = pl.BlockSpec((1, HIDDEN), lambda i: (0, 0))
    w3_spec = pl.BlockSpec((HIDDEN, d_out), lambda i: (0, 0))
    b3_spec = pl.BlockSpec((1, d_out), lambda i: (0, 0))

    out = pl.pallas_call(
        functools.partial(dqn_mlp_kernel, precision=precision),
        out_shape=jax.ShapeDtypeStruct((B, d_out), jnp.float32),
        grid_spec=pltpu.PrefetchScalarGridSpec(
            num_scalar_prefetch=0,
            grid=grid,
            in_specs=[
                pl.BlockSpec((tm, d_in), lambda i: (i, 0)),     # x: batch-tiled, unpadded
                w1_spec, b1_spec, w2_spec, b2_spec, w3_spec, b3_spec,
            ],
            out_specs=pl.BlockSpec((tm, d_out), lambda i: (i, 0)),  # unpadded output
        ),
        compiler_params=pltpu.CompilerParams(
            dimension_semantics=("parallel",),
        ),
    )(x, w1c, b1c, w2c, b2c, w3c, b3c)

    return out


def init_params(key, input_dim, output_dim, hidden=HIDDEN):
    """PyTorch nn.Linear default init: U(-1/sqrt(fan_in), +1/sqrt(fan_in))."""
    def linear(k, fan_in, fan_out):
        kw, kb = jax.random.split(k)
        bound = 1.0 / float(fan_in) ** 0.5
        w = jax.random.uniform(kw, (fan_in, fan_out), jnp.float32, -bound, bound)
        b = jax.random.uniform(kb, (1, fan_out), jnp.float32, -bound, bound)
        return w, b

    k1, k2, k3 = jax.random.split(key, 3)
    w1, b1 = linear(k1, input_dim, hidden)
    w2, b2 = linear(k2, hidden, hidden)
    w3, b3 = linear(k3, hidden, output_dim)
    return {"w1": w1, "b1": b1, "w2": w2, "b2": b2, "w3": w3, "b3": b3}


def dqn_reference(x, params):
    """Pure-JAX f32 reference with HIGHEST matmul precision (PyTorch-f32 parity)."""
    px = jax.lax.Precision.HIGHEST
    h1 = jnp.maximum(jnp.dot(x, params["w1"], precision=px) + params["b1"], 0.0)
    h2 = jnp.maximum(jnp.dot(h1, params["w2"], precision=px) + params["b2"], 0.0)
    return jnp.dot(h2, params["w3"], precision=px) + params["b3"]


if __name__ == "__main__":
    key = jax.random.PRNGKey(0)
    kx, kp = jax.random.split(key)

    batch = 8
    input_dim = 32
    output_dim = 4

    x = jax.random.normal(kx, (batch, input_dim), jnp.float32)
    params = init_params(kp, input_dim, output_dim)
    ref = dqn_reference(x, params)

    # Strict f32 parity path (HIGHEST precision), tight tolerance.
    out_hi = jax.block_until_ready(
        dqn_forward(x, params, precision=jax.lax.Precision.HIGHEST))
    assert out_hi.shape == (batch, output_dim)
    assert jnp.allclose(out_hi, ref, atol=1e-4, rtol=1e-4)

    # Default throughput path (DEFAULT precision), looser tolerance.
    out_def = jax.block_until_ready(dqn_forward(x, params))
    assert out_def.shape == (batch, output_dim)
    assert bool(jnp.all(jnp.isfinite(out_def)))
    assert jnp.allclose(out_def, ref, atol=1e-1, rtol=1e-1)

    # bf16 weight path (f32 accumulation).
    out_bf16 = jax.block_until_ready(dqn_forward(x, params, use_bf16=True))
    assert out_bf16.shape == (batch, output_dim)
    assert bool(jnp.all(jnp.isfinite(out_bf16)))
    assert jnp.allclose(out_bf16, ref, atol=1e-1, rtol=1e-1)

    # Larger, non-tile-divisible batch: exercises the 2-step grid and the masked
    # ragged final block (no host pad/slice anywhere).
    big_batch = 1000
    xb = jax.random.normal(kx, (big_batch, input_dim), jnp.float32)
    out_big = jax.block_until_ready(
        dqn_forward(xb, params, precision=jax.lax.Precision.HIGHEST))
    ref_big = dqn_reference(xb, params)
    assert out_big.shape == (big_batch, output_dim)
    assert jnp.allclose(out_big, ref_big, atol=1e-4, rtol=1e-4)

    print("KERNEL_OK")
</pallas_src>

<mosaic_0001>
module attributes {stable_mosaic.version = 11 : i64} {
  func.func @dqn_mlp_kernel(%arg0: i32, %arg1: memref<8x32xf32, #tpu.memory_space<vmem>>, %arg2: memref<32x128xf32, #tpu.memory_space<vmem>>, %arg3: memref<1x128xf32, #tpu.memory_space<vmem>>, %arg4: memref<128x128xf32, #tpu.memory_space<vmem>>, %arg5: memref<1x128xf32, #tpu.memory_space<vmem>>, %arg6: memref<128x4xf32, #tpu.memory_space<vmem>>, %arg7: memref<1x4xf32, #tpu.memory_space<vmem>>, %arg8: memref<8x4xf32, #tpu.memory_space<vmem>>) attributes {dimension_semantics = [#tpu.dimension_semantics<parallel>], iteration_bounds = array<i64: 1>, scalar_prefetch = 0 : i64, scratch_operands = 0 : i64, tpu.core_type = #tpu.core_type<tc>, window_params = [{transform_indices = @transform_0, window_bounds = array<i64: 8, 32>}, {pipeline_mode = #tpu.pipeline_mode<synchronous>, transform_indices = @transform_1, window_bounds = array<i64: 32, 128>}, {pipeline_mode = #tpu.pipeline_mode<synchronous>, transform_indices = @transform_2, window_bounds = array<i64: 1, 128>}, {pipeline_mode = #tpu.pipeline_mode<synchronous>, transform_indices = @transform_3, window_bounds = array<i64: 128, 128>}, {pipeline_mode = #tpu.pipeline_mode<synchronous>, transform_indices = @transform_4, window_bounds = array<i64: 1, 128>}, {pipeline_mode = #tpu.pipeline_mode<synchronous>, transform_indices = @transform_5, window_bounds = array<i64: 128, 4>}, {pipeline_mode = #tpu.pipeline_mode<synchronous>, transform_indices = @transform_6, window_bounds = array<i64: 1, 4>}, {transform_indices = @transform_7, window_bounds = array<i64: 8, 4>}]} {
    %c0 = arith.constant 0 : index
    %c0_0 = arith.constant 0 : index
    %0 = vector.load %arg1[%c0, %c0_0] : memref<8x32xf32, #tpu.memory_space<vmem>>, vector<8x32xf32>
    %c0_1 = arith.constant 0 : index
    %c0_2 = arith.constant 0 : index
    %1 = vector.load %arg2[%c0_1, %c0_2] : memref<32x128xf32, #tpu.memory_space<vmem>>, vector<32x128xf32>
    %cst = arith.constant dense<0.000000e+00> : vector<8x128xf32>
    %2 = tpu.matmul %0, %1, %cst {dimension_numbers = #tpu.dot_dimension_numbers<[1], [0], [0], [1], [0, 0, 1, 1], [], []>, precision = #tpu.contract_precision<fp32>} : vector<8x32xf32>, vector<32x128xf32>, vector<8x128xf32> -> vector<8x128xf32>
    %c0_3 = arith.constant 0 : index
    %c0_4 = arith.constant 0 : index
    %3 = vector.load %arg3[%c0_3, %c0_4] : memref<1x128xf32, #tpu.memory_space<vmem>>, vector<1x128xf32>
    %4 = vector.broadcast %3 : vector<1x128xf32> to vector<8x128xf32>
    %5 = arith.addf %2, %4 : vector<8x128xf32>
    %cst_5 = arith.constant 0.000000e+00 : f32
    %6 = vector.broadcast %cst_5 : f32 to vector<8x128xf32>
    %7 = arith.maximumf %5, %6 : vector<8x128xf32>
    %c0_6 = arith.constant 0 : index
    %c0_7 = arith.constant 0 : index
    %8 = vector.load %arg4[%c0_6, %c0_7] : memref<128x128xf32, #tpu.memory_space<vmem>>, vector<128x128xf32>
    %cst_8 = arith.constant dense<0.000000e+00> : vector<8x128xf32>
    %9 = tpu.matmul %7, %8, %cst_8 {dimension_numbers = #tpu.dot_dimension_numbers<[1], [0], [0], [1], [0, 0, 1, 1], [], []>, precision = #tpu.contract_precision<fp32>} : vector<8x128xf32>, vector<128x128xf32>, vector<8x128xf32> -> vector<8x128xf32>
    %c0_9 = arith.constant 0 : index
    %c0_10 = arith.constant 0 : index
    %10 = vector.load %arg5[%c0_9, %c0_10] : memref<1x128xf32, #tpu.memory_space<vmem>>, vector<1x128xf32>
    %11 = vector.broadcast %10 : vector<1x128xf32> to vector<8x128xf32>
    %12 = arith.addf %9, %11 : vector<8x128xf32>
    %cst_11 = arith.constant 0.000000e+00 : f32
    %13 = vector.broadcast %cst_11 : f32 to vector<8x128xf32>
    %14 = arith.maximumf %12, %13 : vector<8x128xf32>
    %c0_12 = arith.constant 0 : index
    %c0_13 = arith.constant 0 : index
    %15 = vector.load %arg6[%c0_12, %c0_13] : memref<128x4xf32, #tpu.memory_space<vmem>>, vector<128x4xf32>
    %cst_14 = arith.constant dense<0.000000e+00> : vector<8x4xf32>
    %16 = tpu.matmul %14, %15, %cst_14 {dimension_numbers = #tpu.dot_dimension_numbers<[1], [0], [0], [1], [0, 0, 1, 1], [], []>, precision = #tpu.contract_precision<fp32>} : vector<8x128xf32>, vector<128x4xf32>, vector<8x4xf32> -> vector<8x4xf32>
    %c0_15 = arith.constant 0 : index
    %c0_16 = arith.constant 0 : index
    %17 = vector.load %arg7[%c0_15, %c0_16] : memref<1x4xf32, #tpu.memory_space<vmem>>, vector<1x4xf32>
    %18 = vector.broadcast %17 : vector<1x4xf32> to vector<8x4xf32>
    %19 = arith.addf %16, %18 : vector<8x4xf32>
    %c0_17 = arith.constant 0 : index
    %c0_18 = arith.constant 0 : index
    %20 = vector.load %arg8[%c0_17, %c0_18] : memref<8x4xf32, #tpu.memory_space<vmem>>, vector<8x4xf32>
    tpu.vector_store %arg8[%c0_17, %c0_18], %19 {strides = array<i32>} : memref<8x4xf32, #tpu.memory_space<vmem>>, vector<8x4xf32>,
    return
  }
  func.func @transform_0(%arg0: i32) -> (i32, i32) {
    %c0_i32 = arith.constant 0 : i32
    %c0_i32_0 = arith.constant 0 : i32
    return %arg0, %c0_i32 : i32, i32
  }
  func.func @transform_1(%arg0: i32) -> (i32, i32) {
    %c0_i32 = arith.constant 0 : i32
    %c0_i32_0 = arith.constant 0 : i32
    %c0_i32_1 = arith.constant 0 : i32
    return %c0_i32, %c0_i32_0 : i32, i32
  }
  func.func @transform_2(%arg0: i32) -> (i32, i32) {
    %c0_i32 = arith.constant 0 : i32
    %c0_i32_0 = arith.constant 0 : i32
    %c0_i32_1 = arith.constant 0 : i32
    return %c0_i32, %c0_i32_0 : i32, i32
  }
  func.func @transform_3(%arg0: i32) -> (i32, i32) {
    %c0_i32 = arith.constant 0 : i32
    %c0_i32_0 = arith.constant 0 : i32
    %c0_i32_1 = arith.constant 0 : i32
    return %c0_i32, %c0_i32_0 : i32, i32
  }
  func.func @transform_4(%arg0: i32) -> (i32, i32) {
    %c0_i32 = arith.constant 0 : i32
    %c0_i32_0 = arith.constant 0 : i32
    %c0_i32_1 = arith.constant 0 : i32
    return %c0_i32, %c0_i32_0 : i32, i32
  }
  func.func @transform_5(%arg0: i32) -> (i32, i32) {
    %c0_i32 = arith.constant 0 : i32
    %c0_i32_0 = arith.constant 0 : i32
    %c0_i32_1 = arith.constant 0 : i32
    return %c0_i32, %c0_i32_0 : i32, i32
  }
  func.func @transform_6(%arg0: i32) -> (i32, i32) {
    %c0_i32 = arith.constant 0 : i32
    %c0_i32_0 = arith.constant 0 : i32
    %c0_i32_1 = arith.constant 0 : i32
    return %c0_i32, %c0_i32_0 : i32, i32
  }
  func.func @transform_7(%arg0: i32) -> (i32, i32) {
    %c0_i32 = arith.constant 0 : i32
    %c0_i32_0 = arith.constant 0 : i32
    return %arg0, %c0_i32 : i32, i32
  }
}

</mosaic_0001>

<bundles_post_ra>
// kernel: dqn_forward.1
= control target key start
LH: loop header
LB: loop body
LE: loop exit
PB: predicated region body
PF: predicated region fallthrough
CT: control target
= control target key end

     0   :  { %12 = vsyncpa [#allocation3], 0  ;;  %s1691_s0 = inlined_call_operand.hbm [shape: f32[8,32], index: 0, kind: input, shape index: {}]   ;;  %s1692_s1 = inlined_call_operand.hbm [shape: f32[32,128], index: 1, kind: input, shape index: {}]   ;;  %s1693_s2 = inlined_call_operand.vmem [shape: f32[1,128], index: 2, kind: input, shape index: {}]   ;;  %s1694_s3 = inlined_call_operand.vmem [shape: f32[128,128], index: 3, kind: input, shape index: {}]   ;;  %s1695_s4 = inlined_call_operand.vmem [shape: f32[1,128], index: 4, kind: input, shape index: {}]   ;;  %s1696_s5 = inlined_call_operand.vmem [shape: f32[128,4], index: 5, kind: input, shape index: {}]   ;;  %s1697_s6 = inlined_call_operand.vmem [shape: f32[1,4], index: 6, kind: input, shape index: {}]   ;;  %s1698_s7 = inlined_call_operand.vmem [shape: f32[8,4], index: 7, kind: output, shape index: {}]  }
   0x1   :  { %s19_s26 = sshll.u32 %s1691_s0, 4  ;;  %s20_s26 = int_to_ptr.hbm [resolvable:$true] %s19_s26 }
   0x2   :  { %13 = vsyncpa [#allocation5], 0  ;;  %s1045_s27 = smov [#allocation2]   ;;  %s29_s8 = sshll.u32 %s1692_s1, 4  ;;  %s30_s8 = int_to_ptr.hbm [resolvable:$true] %s29_s8 }
   0x3   :  { %s21_s28 = sshll.u32 %s1045_s27, 4  ;;  %s1046_s9 = smov [#allocation4]   ;;  %s22_s28 = int_to_ptr.vmem [resolvable:$true] %s21_s28 }
   0x4   :  { %24 = dma.hbm_to_vmem [thread:$0]  %s20_s26, 128, %s22_s28, [#allocation3]  }
   0x5   :  { %s31_s10 = sshll.u32 %s1046_s9, 4  ;;  %s1047_s11 = smov 128   ;;  %s32_s10 = int_to_ptr.vmem [resolvable:$true] %s31_s10 }
   0x6   :  { %s1048_s12 = smov 8  }
   0x7   :  { %37 = dma.hbm_to_vmem [thread:$0]  %s30_s8, 512, %s32_s10, [#allocation5], %s1047_s11, %s1047_s11, %s1048_s12  }
   0x8   :  { %1041 = dma.done.wait [#allocation3], 128  }
   0x9   :  { %1042 = vsyncadd [#allocation3], 4294967168 }
   0xa   :  { %1043 = dma.done.wait [#allocation5], 512  }
   0xb   :  { %1044 = vsyncadd [#allocation5], 4294966784  ;;  %vm65_vm0 = vcmask 261120   ;;  %v60_v0 = vld [vmem:[#allocation4 + $0x18] sm:$0xff]  ;;  %v59_v1 = vld [vmem:[#allocation4 + $0x10] sm:$0xff]  ;;  %vm978_vm1 = vcmask 31744  }
   0xc   :  { %v58_v2 = vld [vmem:[#allocation4 + $0x8] sm:$0xff]  ;;  %v1095_v3 = vand.u32 4294901760, %v60_v0  ;;  %v1097_v4 = vand.u32 4294901760, %v59_v1  ;;  %v57_v6 = vld [vmem:[#allocation4] sm:$0xff]  ;;  %v56_v7 = vld [vmem:[#allocation2] sm:$0xff] }
   0xd   :  { %v1099_v5 = vand.u32 4294901760, %v58_v2  ;;  %v270_v8 = vld [vmem:[%s1694_s3 + $0x78] sm:$0xff]  ;;  %v1104_v9 = vand.u32 4294901760, %v57_v6  ;;  %v67_v10 = vsel %vm65_vm0, %v56_v7, 0  ;;  %v269_v12 = vld [vmem:[%s1694_s3 + $0x70] sm:$0xff]  ;;  %v268_v13 = vld [vmem:[%s1694_s3 + $0x68] sm:$0xff] }
   0xe   :  { %v1106_v11 = vand.u32 4294901760, %v270_v8  ;;  %v111_v14 = vsub.f32 %v60_v0, %v1095_v3  ;;  %82 = vmatpush.msra.mxu0 %v1095_v3  ;;  %v1117_v15 = vsub.f32 %v59_v1, %v1097_v4  ;;  %182 = vmatpush.msra.mxu3 %v1095_v3  ;;  %v1123_v17 = vand.u32 4294901760, %v67_v10  ;;  %v267_v38 = vld [vmem:[%s1694_s3 + $0x60] sm:$0xff]  ;;  %v266_v39 = vld [vmem:[%s1694_s3 + $0x58] sm:$0xff]  ;;  %v265_v40 = vld [vmem:[%s1694_s3 + $0x50] sm:$0xff] }
   0xf   :  { %v1121_v16 = vsub.f32 %v58_v2, %v1099_v5  ;;  %v1126_v18 = vsub.f32 %v57_v6, %v1104_v9  ;;  %v1131_v20 = vand.u32 4294901760, %v269_v12  ;;  %v1133_v21 = vand.u32 4294901760, %v268_v13  ;;  %v264_v44 = vld [vmem:[%s1694_s3 + $0x48] sm:$0xff]  ;;  %v263_v45 = vld [vmem:[%s1694_s3 + $0x40] sm:$0xff]  ;;  %v262_v50 = vld [vmem:[%s1694_s3 + $0x38] sm:$0xff] }
  0x10   :  { %v1129_v19 = vsub.f32 %v270_v8, %v1106_v11  ;;  %153 = vmatpush.msra.mxu2 %v111_v14  ;;  %84 = vmatpush.msra.mxu0 %v1097_v4  ;;  %v112_v22 = vand.u32 4294901760, %v111_v14  ;;  %v118_v23 = vand.u32 4294901760, %v1117_v15  ;;  %v90_v24 = vsub.f32 %v67_v10, %v1123_v17  ;;  %v261_v55 = vld [vmem:[%s1694_s3 + $0x30] sm:$0xff]  ;;  %v260_v60 = vld [vmem:[%s1694_s3 + $0x28] sm:$0xff] }
  0x11   :  { %v124_v25 = vand.u32 4294901760, %v1121_v16  ;;  %184 = vmatpush.msra.mxu3 %v1097_v4  ;;  %v130_v26 = vand.u32 4294901760, %v1126_v18  ;;  %v1143_v28 = vsub.f32 %v269_v12, %v1131_v20  ;;  %v1146_v29 = vsub.f32 %v268_v13, %v1133_v21 }
  0x12   :  { %v318_v27 = vand.u32 4294901760, %v1129_v19  ;;  %156 = vmatpush.msra.mxu2 %v1117_v15  ;;  %v113_v30 = vsub.f32 %v111_v14, %v112_v22  ;;  %86 = vmatpush.msra.mxu0 %v1099_v5  ;;  %v119_v31 = vsub.f32 %v1117_v15, %v118_v23  ;;  %v91_v33 = vand.u32 4294901760, %v90_v24 }
  0x13   :  { %v125_v32 = vsub.f32 %v1121_v16, %v124_v25  ;;  %186 = vmatpush.msra.mxu3 %v1099_v5  ;;  %v131_v34 = vsub.f32 %v1126_v18, %v130_v26  ;;  %v324_v36 = vand.u32 4294901760, %v1143_v28  ;;  %v330_v37 = vand.u32 4294901760, %v1146_v29 }
  0x14   :  { %v319_v35 = vsub.f32 %v1129_v19, %v318_v27  ;;  %v114_v41 = vand.u32 4294901760, %v113_v30  ;;  %159 = vmatpush.msra.mxu2 %v1121_v16  ;;  %v120_v42 = vand.u32 4294901760, %v119_v31  ;;  %88 = vmatpush.msra.mxu0 %v1104_v9  ;;  %v92_v43 = vsub.f32 %v90_v24, %v91_v33  ;;  %v259_v30 = vld [vmem:[%s1694_s3 + $0x20] sm:$0xff]  ;;  %v258_v31 = vld [vmem:[%s1694_s3 + $0x18] sm:$0xff] }
  0x15   :  { %v126_v46 = vand.u32 4294901760, %v125_v32  ;;  %188 = vmatpush.msra.mxu3 %v1104_v9  ;;  %v325_v48 = vsub.f32 %v1143_v28, %v324_v36  ;;  %v331_v49 = vsub.f32 %v1146_v29, %v330_v37  ;;  %v1191_v52 = vand.u32 4294901760, %v267_v38  ;;  %v257_v32 = vld [vmem:[%s1694_s3 + $0x10] sm:$0xff] }
  0x16   :  { %211 = vmatpush.msrb.mxu0 %v112_v22  ;;  %v320_v47 = vand.u32 4294901760, %v319_v35  ;;  %115 = vmatpush.msra.mxu1 %v114_v41  ;;  %v93_v51 = vand.u32 4294901760, %v92_v43  ;;  %v1193_v53 = vand.u32 4294901760, %v266_v39  ;;  %v1195_v54 = vand.u32 4294901760, %v265_v40 }
  0x17   :  { %162 = vmatpush.msra.mxu2 %v1126_v18  ;;  %192 = vmatmul.f32.vlgmr.msra.gmra.mxu3 %v91_v33  ;;  %v132_v56 = vand.u32 4294901760, %v131_v34  ;;  %v326_v57 = vand.u32 4294901760, %v325_v48  ;;  %v1200_v58 = vand.u32 4294901760, %v264_v44  ;;  %v1202_v59 = vand.u32 4294901760, %v263_v45 }
  0x18   :  { %165 = vmatmul.f32.vlgmr.msra.gmra.mxu2 %v90_v24  ;;  %121 = vmatpush.msra.mxu1 %v120_v42  ;;  %v1208_v61 = vsub.f32 %v267_v38, %v1191_v52  ;;  %v1211_v62 = vsub.f32 %v266_v39, %v1193_v53  ;;  %v1214_v63 = vsub.f32 %v265_v40, %v1195_v54  ;;  %v1216_v0 = vand.u32 4294901760, %v262_v50  ;;  %v256_v40 = vld [vmem:[%s1694_s3 + $0x8] sm:$0xff] }
  0x19   :  { %94 = vmatmul.f32.vlgmr.msra.gmra.mxu0 %v93_v51  ;;  %321 = vmatpush.msrb.mxu3 %v320_v47  ;;  %v332_v1 = vand.u32 4294901760, %v331_v49  ;;  %v1219_v2 = vsub.f32 %v264_v44, %v1200_v58  ;;  %v1222_v6 = vsub.f32 %v263_v45, %v1202_v59  ;;  %v1224_v7 = vand.u32 4294901760, %v261_v55  ;;  %v255_v45 = vld [vmem:[%s1694_s3] sm:$0xff] }
  0x1a   :  { %215 = vmatpush.msrb.mxu0 %v118_v23  ;;  %127 = vmatpush.msra.mxu1 %v126_v46  ;;  %v336_v8 = vand.u32 4294901760, %v1208_v61  ;;  %v342_v10 = vand.u32 4294901760, %v1211_v62  ;;  %v348_v12 = vand.u32 4294901760, %v1214_v63  ;;  %v1230_v13 = vand.u32 4294901760, %v260_v60 }
  0x1b   :  { %276 = vmatpush.msrb.mxu2 %v1106_v11  ;;  %327 = vmatpush.msrb.mxu3 %v326_v57  ;;  %v354_v14 = vand.u32 4294901760, %v1219_v2  ;;  %v1236_v15 = vsub.f32 %v262_v50, %v1216_v0  ;;  %v360_v16 = vand.u32 4294901760, %v1222_v6  ;;  %v1279_v38 = vand.u32 4294901760, %v259_v30 }
  0x1c   :  { %219 = vmatpush.msrb.mxu0 %v124_v25  ;;  %133 = vmatpush.msra.mxu1 %v132_v56  ;;  %v337_v22 = vsub.f32 %v1208_v61, %v336_v8  ;;  %v343_v23 = vsub.f32 %v1211_v62, %v342_v10  ;;  %v349_v24 = vsub.f32 %v1214_v63, %v348_v12  ;;  %v1281_v39 = vand.u32 4294901760, %v258_v31 }
  0x1d   :  { %278 = vmatpush.msrb.mxu2 %v1131_v20  ;;  %135 = vmatmul.f32.vlgmr.msra.gmra.mxu1 %v1123_v17  ;;  %v1253_v25 = vsub.f32 %v261_v55, %v1224_v7  ;;  %v355_v34 = vsub.f32 %v1219_v2, %v354_v14  ;;  %v366_v35 = vand.u32 4294901760, %v1236_v15  ;;  %v1288_v42 = vand.u32 4294901760, %v257_v32 }
  0x1e   :  { %223 = vmatpush.msrb.mxu0 %v130_v26  ;;  %242 = vmatpush.msrb.mxu1 %v1095_v3  ;;  %v338_v18 = vand.u32 4294901760, %v337_v22  ;;  %v1263_v26 = vsub.f32 %v260_v60, %v1230_v13  ;;  %v344_v33 = vand.u32 4294901760, %v343_v23  ;;  %v361_v3 = vsub.f32 %v1222_v6, %v360_v16 }
  0x1f   :  { %333 = vmatpush.msrb.mxu3 %v332_v1  ;;  %280 = vmatpush.msrb.mxu2 %v1133_v21  ;;  %v350_v41 = vand.u32 4294901760, %v349_v24  ;;  %v1293_v44 = vsub.f32 %v259_v30, %v1279_v38  ;;  %v356_v46 = vand.u32 4294901760, %v355_v34  ;;  %v367_v47 = vsub.f32 %v1236_v15, %v366_v35 }
  0x20   :  { %419 = vmatpush.msra.mxu0 %v1129_v19  ;;  %244 = vmatpush.msrb.mxu1 %v1097_v4  ;;  %v372_v4 = vand.u32 4294901760, %v1253_v25  ;;  %v378_v43 = vand.u32 4294901760, %v1263_v26  ;;  %v1306_v48 = vand.u32 4294901760, %v256_v40  ;;  %v362_v49 = vand.u32 4294901760, %v361_v3 }
  0x21   :  { %225 = vmatmul.f32.vlgmr.msrb.gmra.mxu0 %v1123_v17  ;;  %339 = vmatpush.msrb.mxu3 %v338_v18  ;;  %v384_v51 = vand.u32 4294901760, %v1293_v44  ;;  %v1316_v55 = vsub.f32 %v257_v32, %v1288_v42  ;;  %v1318_v56 = vand.u32 4294901760, %v255_v45 }
  0x22   :  { %282 = vmatpush.msrb.mxu2 %v1191_v52  ;;  %246 = vmatpush.msrb.mxu1 %v1099_v5  ;;  %v1304_v5 = vsub.f32 %v258_v31, %v1281_v39  ;;  %v373_v50 = vsub.f32 %v1253_v25, %v372_v4  ;;  %v1327_v60 = vsub.f32 %v256_v40, %v1306_v48 }
  0x23   :  { %422 = vmatpush.msra.mxu0 %v1143_v28  ;;  %345 = vmatpush.msrb.mxu3 %v344_v33  ;;  %v385_v22 = vsub.f32 %v1293_v44, %v384_v51  ;;  %v396_v23 = vand.u32 4294901760, %v1316_v55  ;;  %v1337_v24 = vsub.f32 %v255_v45, %v1318_v56  ;;  %v630_v28 = vld [vmem:[%s1696_s5 + $0x68] sm:$0xff] }
  0x24   :  { %284 = vmatpush.msrb.mxu2 %v1193_v53  ;;  %248 = vmatpush.msrb.mxu1 %v1104_v9  ;;  %v368_v9 = vand.u32 4294901760, %v367_v47  ;;  %v390_v57 = vand.u32 4294901760, %v1304_v5  ;;  %v374_v1 = vand.u32 4294901760, %v373_v50  ;;  %v402_v18 = vand.u32 4294901760, %v1327_v60 }
  0x25   :  { %425 = vmatpush.msra.mxu0 %v1146_v29  ;;  %250 = vmatmul.f32.vlgmr.msrb.gmra.mxu1 %v1123_v17  ;;  %v379_v17 = vsub.f32 %v1263_v26, %v378_v43  ;;  %v386_v32 = vand.u32 4294901760, %v385_v22  ;;  %v397_v33 = vsub.f32 %v1316_v55, %v396_v23  ;;  %v408_v34 = vand.u32 4294901760, %v1337_v24 }
  0x26   :  { %351 = vmatpush.msrb.mxu3 %v350_v41  ;;  %286 = vmatpush.msrb.mxu2 %v1195_v54  ;;  %v391_v31 = vsub.f32 %v1304_v5, %v390_v57  ;;  %v403_v40 = vsub.f32 %v1327_v60, %v402_v18 }
  0x27   :  { %472 = vmatpush.msra.mxu1 %v1106_v11  ;;  %428 = vmatpush.msra.mxu0 %v1208_v61  ;;  %v380_v30 = vand.u32 4294901760, %v379_v17  ;;  %v398_v41 = vand.u32 4294901760, %v397_v33  ;;  %v409_v45 = vsub.f32 %v1337_v24, %v408_v34 }
  0x28   :  { %357 = vmatpush.msrb.mxu3 %v356_v46  ;;  %288 = vmatpush.msrb.mxu2 %v1200_v58  ;;  %v392_v3 = vand.u32 4294901760, %v391_v31  ;;  %v404_v46 = vand.u32 4294901760, %v403_v40 }
  0x29   :  { %474 = vmatpush.msra.mxu1 %v1131_v20  ;;  %431 = vmatpush.msra.mxu0 %v1211_v62  ;;  %v410_v47 = vand.u32 4294901760, %v409_v45  ;;  %v620_v45 = vld [vmem:[%s1696_s5 + $0x18] sm:$0xff] }
  0x2a   :  { %363 = vmatpush.msrb.mxu3 %v362_v49  ;;  %290 = vmatpush.msrb.mxu2 %v1202_v59 }
  0x2b   :  { %476 = vmatpush.msra.mxu1 %v1133_v21  ;;  %434 = vmatpush.msra.mxu0 %v1214_v63 }
  0x2c   :  { %369 = vmatpush.msrb.mxu3 %v368_v9  ;;  %292 = vmatpush.msrb.mxu2 %v1216_v0  ;;  %v623_v9 = vld [vmem:[%s1696_s5 + $0x30] sm:$0xff] }
  0x2d   :  { %478 = vmatpush.msra.mxu1 %v1191_v52  ;;  %437 = vmatpush.msra.mxu0 %v1219_v2  ;;  %v626_v2 = vld [vmem:[%s1696_s5 + $0x48] sm:$0xff]  ;;  %v1541_v33 = vand.u32 4294901760, %v623_v9 }
  0x2e   :  { %375 = vmatpush.msrb.mxu3 %v374_v1  ;;  %294 = vmatpush.msrb.mxu2 %v1224_v7  ;;  %v622_v1 = vld [vmem:[%s1696_s5 + $0x28] sm:$0xff] }
  0x2f   :  { %480 = vmatpush.msra.mxu1 %v1193_v53  ;;  %440 = vmatpush.msra.mxu0 %v1222_v6 }
  0x30   :  { %381 = vmatpush.msrb.mxu3 %v380_v30  ;;  %296 = vmatpush.msrb.mxu2 %v1230_v13  ;;  %v621_v30 = vld [vmem:[%s1696_s5 + $0x20] sm:$0xff] }
  0x31   :  { %482 = vmatpush.msra.mxu1 %v1195_v54  ;;  %443 = vmatpush.msra.mxu0 %v1236_v15 }
  0x32   :  { %387 = vmatpush.msrb.mxu3 %v386_v32  ;;  %298 = vmatpush.msrb.mxu2 %v1279_v38 }
  0x33   :  { %484 = vmatpush.msra.mxu1 %v1200_v58  ;;  %446 = vmatpush.msra.mxu0 %v1253_v25 }
  0x34   :  { %393 = vmatpush.msrb.mxu3 %v392_v3  ;;  %300 = vmatpush.msrb.mxu2 %v1281_v39 }
  0x35   :  { %486 = vmatpush.msra.mxu1 %v1202_v59  ;;  %449 = vmatpush.msra.mxu0 %v1263_v26 }
  0x36   :  { %399 = vmatpush.msrb.mxu3 %v398_v41  ;;  %302 = vmatpush.msrb.mxu2 %v1288_v42  ;;  %v1546_v41 = vand.u32 4294901760, %v622_v1 }
  0x37   :  { %488 = vmatpush.msra.mxu1 %v1216_v0  ;;  %452 = vmatpush.msra.mxu0 %v1293_v44 }
  0x38   :  { %405 = vmatpush.msrb.mxu3 %v404_v46  ;;  %304 = vmatpush.msrb.mxu2 %v1306_v48 }
  0x39   :  { %490 = vmatpush.msra.mxu1 %v1224_v7  ;;  %455 = vmatpush.msra.mxu0 %v1304_v5 }
  0x3a   :  { %411 = vmatpush.msrb.mxu3 %v410_v47  ;;  %306 = vmatpush.msrb.mxu2 %v1318_v56 }
  0x3b   :  { %492 = vmatpush.msra.mxu1 %v1230_v13  ;;  %458 = vmatpush.msra.mxu0 %v1316_v55  ;;  %v625_v55 = vld [vmem:[%s1696_s5 + $0x40] sm:$0xff] }
  0x3c   :  { %580 = vmatpush.msra.mxu3 %v1106_v11  ;;  %513 = vmatpush.msra.mxu2 %v318_v27  ;;  %v990_v11 = vld [vmem:[%s1693_s2] ss:$0 sm:$0xff]  ;;  %v631_v27 = vld [vmem:[%s1696_s5 + $0x70] sm:$0xff] }
  0x3d   :  { %494 = vmatpush.msra.mxu1 %v1279_v38  ;;  %461 = vmatpush.msra.mxu0 %v1327_v60 }
  0x3e   :  { %582 = vmatpush.msra.mxu3 %v1131_v20  ;;  %517 = vmatpush.msra.mxu2 %v324_v36 }
  0x3f   :  { %496 = vmatpush.msra.mxu1 %v1281_v39  ;;  %464 = vmatpush.msra.mxu0 %v1337_v24 }
  0x40   :  { %584 = vmatpush.msra.mxu3 %v1133_v21  ;;  %521 = vmatpush.msra.mxu2 %v330_v37  ;;  %v632_v21 = vld [vmem:[%s1696_s5 + $0x78] sm:$0xff] }
  0x41   :  { %498 = vmatpush.msra.mxu1 %v1288_v42  ;;  %v1448_v37 = vand.u32 4294901760, %v632_v21 }
  0x42   :  { %586 = vmatpush.msra.mxu3 %v1191_v52  ;;  %525 = vmatpush.msra.mxu2 %v336_v8  ;;  %v1450_v52 = vand.u32 4294901760, %v631_v27 }
  0x43   :  { %500 = vmatpush.msra.mxu1 %v1306_v48  ;;  %638 = vmatpush.msrb.mxu0 %v1448_v37 }
  0x44   :  { %588 = vmatpush.msra.mxu3 %v1193_v53  ;;  %529 = vmatpush.msra.mxu2 %v342_v10  ;;  %v1452_v53 = vand.u32 4294901760, %v630_v28  ;;  %v1476_v8 = vsub.f32 %v631_v27, %v1450_v52 }
  0x45   :  { %502 = vmatpush.msra.mxu1 %v1318_v56  ;;  %640 = vmatpush.msrb.mxu0 %v1450_v52 }
  0x46   :  { %590 = vmatpush.msra.mxu3 %v1195_v54  ;;  %533 = vmatpush.msra.mxu2 %v348_v12  ;;  %v629_v54 = vld [vmem:[%s1696_s5 + $0x60] sm:$0xff]  ;;  %v1479_v10 = vsub.f32 %v630_v28, %v1452_v53  ;;  %v1482_v12 = vand.u32 4294901760, %v626_v2 }
  0x47   :  { %v1463_v62 = vand.u32 4294901760, %v629_v54  ;;  %642 = vmatpush.msrb.mxu0 %v1452_v53 }
  0x48   :  { %592 = vmatpush.msra.mxu3 %v1200_v58  ;;  %537 = vmatpush.msra.mxu2 %v354_v14  ;;  %v628_v58 = vld [vmem:[%s1696_s5 + $0x58] sm:$0xff] }
  0x49   :  { %v1465_v63 = vand.u32 4294901760, %v628_v58  ;;  %v1485_v14 = vsub.f32 %v629_v54, %v1463_v62  ;;  %644 = vmatpush.msrb.mxu0 %v1463_v62  ;;  %v1572_v54 = vand.u32 4294901760, %v620_v45 }
  0x4a   :  { %594 = vmatpush.msra.mxu3 %v1202_v59  ;;  %541 = vmatpush.msra.mxu2 %v360_v16  ;;  %v627_v59 = vld [vmem:[%s1696_s5 + $0x50] sm:$0xff] }
  0x4b   :  { %v1488_v15 = vsub.f32 %v628_v58, %v1465_v63  ;;  %646 = vmatpush.msrb.mxu0 %v1465_v63 }
  0x4c   :  { %596 = vmatpush.msra.mxu3 %v1216_v0  ;;  %545 = vmatpush.msra.mxu2 %v366_v35  ;;  %v1467_v0 = vand.u32 4294901760, %v627_v59  ;;  %v686_v35 = vand.u32 4294901760, %v1476_v8 }
  0x4e   :  { %598 = vmatpush.msra.mxu3 %v1224_v7  ;;  %549 = vmatpush.msra.mxu2 %v372_v4  ;;  %v1473_v7 = vsub.f32 %v632_v21, %v1448_v37  ;;  %v1491_v16 = vsub.f32 %v627_v59, %v1467_v0  ;;  %v698_v4 = vand.u32 4294901760, %v1485_v14  ;;  %v687_v5 = vsub.f32 %v1476_v8, %v686_v35 }
  0x4f   :  { %648 = vmatpush.msrb.mxu0 %v1467_v0 }
  0x50   :  { %600 = vmatpush.msra.mxu3 %v1230_v13  ;;  %553 = vmatpush.msra.mxu2 %v378_v43  ;;  %v680_v26 = vand.u32 4294901760, %v1473_v7  ;;  %v1500_v43 = vsub.f32 %v626_v2, %v1482_v12  ;;  %v699_v50 = vsub.f32 %v1485_v14, %v698_v4  ;;  %v688_v60 = vand.u32 4294901760, %v687_v5 }
  0x51   :  { %650 = vmatpush.msrb.mxu0 %v1482_v12  ;;  %v1589_v5 = vsub.f32 %v620_v45, %v1572_v54 }
  0x52   :  { %602 = vmatpush.msra.mxu3 %v1279_v38  ;;  %557 = vmatpush.msra.mxu2 %v384_v51  ;;  %v692_v38 = vand.u32 4294901760, %v1479_v10  ;;  %v681_v44 = vsub.f32 %v1473_v7, %v680_v26  ;;  %v710_v51 = vand.u32 4294901760, %v1491_v16  ;;  %v716_v24 = vand.u32 4294901760, %v1500_v43 }
  0x53   :  { %v700_v3 = vand.u32 4294901760, %v699_v50 }
  0x54   :  { %604 = vmatpush.msra.mxu3 %v1281_v39  ;;  %561 = vmatpush.msra.mxu2 %v390_v57  ;;  %v682_v57 = vand.u32 4294901760, %v681_v44  ;;  %v711_v40 = vsub.f32 %v1491_v16, %v710_v51  ;;  %v717_v27 = vsub.f32 %v1500_v43, %v716_v24 }
  0x56   :  { %606 = vmatpush.msra.mxu3 %v1288_v42  ;;  %565 = vmatpush.msra.mxu2 %v396_v23  ;;  %v704_v42 = vand.u32 4294901760, %v1488_v15  ;;  %v712_v59 = vand.u32 4294901760, %v711_v40  ;;  %v618_v40 = vld [vmem:[%s1696_s5 + $0x8] sm:$0xff] }
  0x57   :  { %683 = vmatpush.msrb.mxu1 %v682_v57  ;;  %v752_v57 = vand.u32 4294901760, %v1589_v5 }
  0x58   :  { %608 = vmatpush.msra.mxu3 %v1306_v48  ;;  %569 = vmatpush.msra.mxu2 %v402_v18  ;;  %v693_v48 = vsub.f32 %v1479_v10, %v692_v38  ;;  %v705_v23 = vsub.f32 %v1488_v15, %v704_v42  ;;  %v1536_v18 = vand.u32 4294901760, %v625_v55 }
  0x59   :  { %689 = vmatpush.msrb.mxu1 %v688_v60 }
  0x5a   :  { %610 = vmatpush.msra.mxu3 %v1318_v56  ;;  %573 = vmatpush.msra.mxu2 %v408_v34  ;;  %v624_v56 = vld [vmem:[%s1696_s5 + $0x38] sm:$0xff]  ;;  %v694_v31 = vand.u32 4294901760, %v693_v48  ;;  %v1552_v46 = vsub.f32 %v625_v55, %v1536_v18  ;;  %v706_v21 = vand.u32 4294901760, %v705_v23  ;;  %v753_v23 = vsub.f32 %v1589_v5, %v752_v57 }
  0x5b   :  { %v1539_v32 = vand.u32 4294901760, %v624_v56  ;;  %652 = vmatpush.msrb.mxu0 %v1536_v18 }
  0x5c   :  { %695 = vmatpush.msrb.mxu1 %v694_v31  ;;  %v722_v28 = vand.u32 4294901760, %v1552_v46  ;;  %v754_v31 = vand.u32 4294901760, %v753_v23 }
  0x5d   :  { %v1555_v47 = vsub.f32 %v624_v56, %v1539_v32  ;;  %654 = vmatpush.msrb.mxu0 %v1539_v32 }
  0x5e   :  { %701 = vmatpush.msrb.mxu1 %v700_v3 }
  0x5f   :  { %656 = vmatpush.msrb.mxu0 %v1541_v33 }
  0x60   :  { %707 = vmatpush.msrb.mxu1 %v706_v21  ;;  %v617_v21 = vld [vmem:[%s1696_s5] sm:$0xff] }
  0x61   :  { %658 = vmatpush.msrb.mxu0 %v1546_v41 }
  0x62   :  { %713 = vmatpush.msrb.mxu1 %v712_v59  ;;  %v667_v59 = vand.u32 4294901760, %v617_v21 }
  0x96   :  { %v95_v19 = vpop.f32.mrf.mxu0 }
  0x97   :  { %v96_v20 = vadd.f32 %v990_v11, %v95_v19  ;;  %v1559_v11 = vsub.f32 %v623_v9, %v1541_v33  ;;  %v1561_v19 = vand.u32 4294901760, %v621_v30 }
  0x99   :  { %v734_v2 = vand.u32 4294901760, %v1559_v11  ;;  %660 = vmatpush.msrb.mxu0 %v1561_v19 }
  0x9a   :  { %v136_v29 = vpop.f32.mrf.mxu1  ;;  %v193_v6 = vpop.f32.mrf.mxu3 }
  0x9b   :  { %v166_v36 = vpop.f32.mrf.mxu2  ;;  %v137_v61 = vadd.f32 %v136_v29, %v96_v20  ;;  %v728_v29 = vand.u32 4294901760, %v1555_v47  ;;  %v735_v50 = vsub.f32 %v1559_v11, %v734_v2  ;;  %662 = vmatpush.msrb.mxu0 %v1572_v54 }
  0x9d   :  { %v167_v13 = vadd.f32 %v166_v36, %v137_v61  ;;  %v1570_v36 = vsub.f32 %v622_v1, %v1546_v41  ;;  %v723_v61 = vsub.f32 %v1552_v46, %v722_v28  ;;  %v736_v60 = vand.u32 4294901760, %v735_v50 }
  0x9e   :  { %v226_v25 = vpop.f32.mrf.mxu0 }
  0x9f   :  { %v194_v39 = vadd.f32 %v193_v6, %v167_v13  ;;  %v1580_v6 = vsub.f32 %v621_v30, %v1561_v19  ;;  %v740_v44 = vand.u32 4294901760, %v1570_v36 }
  0xa1   :  { %v227_v49 = vadd.f32 %v226_v25, %v194_v39  ;;  %v718_v25 = vand.u32 4294901760, %v717_v27  ;;  %v729_v39 = vsub.f32 %v1555_v47, %v728_v29  ;;  %v746_v55 = vand.u32 4294901760, %v1580_v6 }
  0xa2   :  { %v251_v17 = vpop.f32.mrf.mxu1 }
  0xa3   :  { %v252_v22 = vadd.f32 %v251_v17, %v227_v49  ;;  %v724_v49 = vand.u32 4294901760, %v723_v61  ;;  %719 = vmatpush.msrb.mxu1 %v718_v25  ;;  %v730_v9 = vand.u32 4294901760, %v729_v39  ;;  %v741_v17 = vsub.f32 %v1570_v36, %v740_v44 }
  0xa4   :  { %v747_v1 = vsub.f32 %v1580_v6, %v746_v55  ;;  %v769_v25 = vsub.f32 %v617_v21, %v667_v59 }
  0xa5   :  { %v254_v34 = vmax.f32 %v252_v22, 0.0  ;;  %725 = vmatpush.msrb.mxu1 %v724_v49  ;;  %v742_v22 = vand.u32 4294901760, %v741_v17 }
  0xa6   :  { %v748_v30 = vand.u32 4294901760, %v747_v1  ;;  %v770_v49 = vand.u32 4294901760, %v769_v25 }
  0xa7   :  { %v307_v20 = vand.u32 4294901760, %v254_v34  ;;  %731 = vmatpush.msrb.mxu1 %v730_v9 }
  0xa9   :  { %v308_v58 = vsub.f32 %v254_v34, %v307_v20  ;;  %413 = vmatmul.f32.vlgmr.msrb.gmra.mxu3 %v307_v20  ;;  %737 = vmatpush.msrb.mxu1 %v736_v60  ;;  %v619_v34 = vld [vmem:[%s1696_s5 + $0x10] sm:$0xff] }
  0xaa   :  { %834 = vmatpush.msrb.mxu3 %v1448_v37  ;;  %v663_v3 = vand.u32 4294901760, %v619_v34 }
  0xab   :  { %467 = vmatmul.f32.vlgmr.msra.gmra.mxu0 %v308_v58  ;;  %v309_v13 = vand.u32 4294901760, %v308_v58  ;;  %743 = vmatpush.msrb.mxu1 %v742_v22 }
  0xac   :  { %836 = vmatpush.msrb.mxu3 %v1450_v52  ;;  %v757_v45 = vsub.f32 %v619_v34, %v663_v3  ;;  %664 = vmatpush.msrb.mxu0 %v663_v3 }
  0xad   :  { %506 = vmatmul.f32.vlgmr.msra.gmra.mxu1 %v309_v13  ;;  %v310_v48 = vsub.f32 %v308_v58, %v309_v13 }
  0xae   :  { %838 = vmatpush.msrb.mxu3 %v1452_v53  ;;  %749 = vmatpush.msrb.mxu1 %v748_v30  ;;  %v758_v27 = vand.u32 4294901760, %v757_v45 }
  0xaf   :  { %v311_v56 = vand.u32 4294901760, %v310_v48 }
  0xb0   :  { %840 = vmatpush.msrb.mxu3 %v1463_v62  ;;  %755 = vmatpush.msrb.mxu1 %v754_v31  ;;  %v759_v61 = vsub.f32 %v757_v45, %v758_v27 }
  0xb1   :  { %312 = vmatmul.f32.vlgmr.msrb.gmra.mxu2 %v311_v56  ;;  %612 = vmatmul.f32.vlgmr.msra.gmra.mxu3 %v307_v20  ;;  %v771_v56 = vsub.f32 %v769_v25, %v770_v49 }
  0xb2   :  { %781 = vmatpush.msrb.mxu2 %v1473_v7  ;;  %842 = vmatpush.msrb.mxu3 %v1465_v63  ;;  %v760_v39 = vand.u32 4294901760, %v759_v61 }
  0xb3   :  { %v772_v9 = vand.u32 4294901760, %v771_v56 }
  0xb4   :  { %784 = vmatpush.msrb.mxu2 %v1476_v8  ;;  %844 = vmatpush.msrb.mxu3 %v1467_v0 }
  0xb5   :  { %761 = vmatpush.msrb.mxu1 %v760_v39 }
  0xb6   :  { %787 = vmatpush.msrb.mxu2 %v1479_v10  ;;  %846 = vmatpush.msrb.mxu3 %v1482_v12 }
  0xb8   :  { %790 = vmatpush.msrb.mxu2 %v1485_v14  ;;  %848 = vmatpush.msrb.mxu3 %v1536_v18 }
  0xb9   :  { %575 = vmatmul.f32.vlgmr.msra.gmra.mxu2 %v307_v20  ;;  %v665_v20 = vand.u32 4294901760, %v618_v40 }
  0xba   :  { %793 = vmatpush.msrb.mxu2 %v1488_v15  ;;  %850 = vmatpush.msrb.mxu3 %v1539_v32 }
  0xbb   :  { %v763_v58 = vsub.f32 %v618_v40, %v665_v20  ;;  %666 = vmatpush.msrb.mxu0 %v665_v20 }
  0xbc   :  { %796 = vmatpush.msrb.mxu2 %v1491_v16  ;;  %852 = vmatpush.msrb.mxu3 %v1541_v33 }
  0xbd   :  { %v764_v13 = vand.u32 4294901760, %v763_v58  ;;  %668 = vmatpush.msrb.mxu0 %v667_v59 }
  0xbe   :  { %799 = vmatpush.msrb.mxu2 %v1500_v43  ;;  %854 = vmatpush.msrb.mxu3 %v1546_v41 }
  0xbf   :  { %875 = vmatpush.msra.mxu0 %v680_v26  ;;  %v765_v48 = vsub.f32 %v763_v58, %v764_v13 }
  0xc0   :  { %802 = vmatpush.msrb.mxu2 %v1552_v46  ;;  %856 = vmatpush.msrb.mxu3 %v1561_v19 }
  0xc1   :  { %879 = vmatpush.msra.mxu0 %v686_v35  ;;  %v766_v50 = vand.u32 4294901760, %v765_v48 }
  0xc2   :  { %805 = vmatpush.msrb.mxu2 %v1555_v47  ;;  %858 = vmatpush.msrb.mxu3 %v1572_v54 }
  0xc3   :  { %883 = vmatpush.msra.mxu0 %v692_v38  ;;  %767 = vmatpush.msrb.mxu1 %v766_v50 }
  0xc4   :  { %808 = vmatpush.msrb.mxu2 %v1559_v11  ;;  %860 = vmatpush.msrb.mxu3 %v663_v3 }
  0xc5   :  { %887 = vmatpush.msra.mxu0 %v698_v4  ;;  %773 = vmatpush.msrb.mxu1 %v772_v9 }
  0xc6   :  { %811 = vmatpush.msrb.mxu2 %v1570_v36  ;;  %862 = vmatpush.msrb.mxu3 %v665_v20 }
  0xc7   :  { %942 = vmatpush.msra.mxu1 %v1448_v37  ;;  %891 = vmatpush.msra.mxu0 %v704_v42  ;;  %v991_v37 = vld [vmem:[%s1695_s4] ss:$0 sm:$0xff] }
  0xc8   :  { %814 = vmatpush.msrb.mxu2 %v1580_v6  ;;  %864 = vmatpush.msrb.mxu3 %v667_v59 }
  0xc9   :  { %944 = vmatpush.msra.mxu1 %v1450_v52  ;;  %895 = vmatpush.msra.mxu0 %v710_v51  ;;  %v992_v51 = vld [vmem:[%s1697_s6] ss:$0 sm:$0xff] }
  0xca   :  { %817 = vmatpush.msrb.mxu2 %v1589_v5 }
  0xcb   :  { %946 = vmatpush.msra.mxu1 %v1452_v53  ;;  %899 = vmatpush.msra.mxu0 %v716_v24 }
  0xcc   :  { %820 = vmatpush.msrb.mxu2 %v757_v45 }
  0xcd   :  { %948 = vmatpush.msra.mxu1 %v1463_v62  ;;  %903 = vmatpush.msra.mxu0 %v722_v28 }
  0xce   :  { %823 = vmatpush.msrb.mxu2 %v763_v58 }
  0xcf   :  { %950 = vmatpush.msra.mxu1 %v1465_v63  ;;  %907 = vmatpush.msra.mxu0 %v728_v29 }
  0xd0   :  { %826 = vmatpush.msrb.mxu2 %v769_v25 }
  0xd1   :  { %952 = vmatpush.msra.mxu1 %v1467_v0  ;;  %911 = vmatpush.msra.mxu0 %v734_v2 }
  0xd3   :  { %954 = vmatpush.msra.mxu1 %v1482_v12  ;;  %915 = vmatpush.msra.mxu0 %v740_v44 }
  0xd5   :  { %956 = vmatpush.msra.mxu1 %v1536_v18  ;;  %919 = vmatpush.msra.mxu0 %v746_v55 }
  0xd7   :  { %958 = vmatpush.msra.mxu1 %v1539_v32  ;;  %923 = vmatpush.msra.mxu0 %v752_v57 }
  0xd9   :  { %960 = vmatpush.msra.mxu1 %v1541_v33  ;;  %927 = vmatpush.msra.mxu0 %v758_v27 }
  0xdb   :  { %962 = vmatpush.msra.mxu1 %v1546_v41  ;;  %931 = vmatpush.msra.mxu0 %v764_v13 }
  0xdd   :  { %964 = vmatpush.msra.mxu1 %v1561_v19  ;;  %935 = vmatpush.msra.mxu0 %v770_v49 }
  0xdf   :  { %966 = vmatpush.msra.mxu1 %v1572_v54 }
  0xe1   :  { %968 = vmatpush.msra.mxu1 %v663_v3 }
  0xe3   :  { %970 = vmatpush.msra.mxu1 %v665_v20 }
  0xe5   :  { %972 = vmatpush.msra.mxu1 %v667_v59 }
 0x128   :  { %v468_v0 = vpop.f32.mrf.mxu0 }
 0x12a   :  { %v507_v8 = vpop.f32.mrf.mxu1 }
 0x12c   :  { %v414_v52 = vpop.f32.mrf.mxu3 }
 0x134   :  { %v313_v53 = vpop.f32.mrf.mxu2  ;;  %v613_v15 = vpop.f32.mrf.mxu3 }
 0x135   :  { %v314_v62 = vadd.f32 %v991_v37, %v313_v53 }
 0x137   :  { %v415_v63 = vadd.f32 %v414_v52, %v314_v62 }
 0x139   :  { %v469_v7 = vadd.f32 %v468_v0, %v415_v63 }
 0x13b   :  { %v508_v10 = vadd.f32 %v507_v8, %v469_v7 }
 0x13c   :  { %v576_v12 = vpop.f32.mrf.mxu2 }
 0x13d   :  { %v577_v14 = vadd.f32 %v576_v12, %v508_v10 }
 0x13f   :  { %v614_v16 = vadd.f32 %v613_v15, %v577_v14 }
 0x141   :  { %v616_v26 = vmax.f32 %v614_v16, 0.0 }
 0x143   :  { %v669_v35 = vand.u32 4294901760, %v616_v26 }
 0x145   :  { %v670_v38 = vsub.f32 %v616_v26, %v669_v35  ;;  %775 = vmatmul.f32.vlgmr.msrb.gmra.mxu1 %v669_v35 }
 0x147   :  { %829 = vmatmul.f32.vlgmr.msrb.gmra.mxu2 %v670_v38  ;;  %v671_v4 = vand.u32 4294901760, %v670_v38 }
 0x149   :  { %868 = vmatmul.f32.vlgmr.msrb.gmra.mxu3 %v671_v4  ;;  %v672_v42 = vsub.f32 %v670_v38, %v671_v4 }
 0x14b   :  { %v673_v43 = vand.u32 4294901760, %v672_v42 }
 0x14d   :  { %674 = vmatmul.f32.vlgmr.msrb.gmra.mxu0 %v673_v43  ;;  %974 = vmatmul.f32.vlgmr.msra.gmra.mxu1 %v669_v35 }
 0x155   :  { %937 = vmatmul.f32.vlgmr.msra.gmra.mxu0 %v669_v35 }
 0x1c2   :  { %v776_v24 = vpop.f32.mrf.mxu1 }
 0x1ca   :  { %v675_v18 = vpop.f32.mrf.mxu0  ;;  %v830_v41 = vpop.f32.mrf.mxu2 }
 0x1cb   :  { %v676_v32 = vadd.f32 %v992_v51, %v675_v18  ;;  %v975_v29 = vpop.f32.mrf.mxu1 }
 0x1cc   :  { %v869_v47 = vpop.f32.mrf.mxu3 }
 0x1cd   :  { %v777_v33 = vadd.f32 %v776_v24, %v676_v32 }
 0x1cf   :  { %v831_v46 = vadd.f32 %v830_v41, %v777_v33 }
 0x1d1   :  { %v870_v11 = vadd.f32 %v869_v47, %v831_v46 }
 0x1d2   :  { %v938_v19 = vpop.f32.mrf.mxu0 }
 0x1d3   :  { %v939_v28 = vadd.f32 %v938_v19, %v870_v11 }
 0x1d5   :  { %v976_v36 = vadd.f32 %v975_v29, %v939_v28 }
 0x1d7   :  { %979 = vst.msk [vmem:[%s1698_s7] sm:$0xff] %vm978_vm1, %v976_v36 }
 0x1d8   :  { %984 = vsyncpa [#allocation3], 1 }
 0x1d9   :  { %985 = vsyncpa [#allocation5], 1 }

</bundles_post_ra>
